<compile_context>
chip_gen: v7x
topology: tpu7x:2x2x1
jax: 0.10.0
libtpu: 0.0.40
codegen_flags: <defaults>
</compile_context>

<pallas_src>
import functools

import numpy as np
import jax
import jax.numpy as jnp
from jax.experimental import pallas as pl
from jax.experimental.pallas import tpu as pltpu


# -----------------------------------------------------------------------------
# tile helpers (fall back to full dim when it does not divide; full-dim blocks
# always satisfy the (8, 128) BlockSpec constraint)
# -----------------------------------------------------------------------------
def _pick_sublane_tile(n, prefs=(256, 128, 64, 32, 16, 8)):
    for p in prefs:
        if n % p == 0:
            return p
    return n


def _pick_lane_tile(n, prefs=(512, 256, 128)):
    for p in prefs:
        if n % p == 0:
            return p
    return n


# -----------------------------------------------------------------------------
# Kernel 1: PairwiseMLP over a tile of edges (transposed layout).
#   inputs per tile: x0^T, x1^T  (F, TILE_E)
#   h1 = relu(W1a^T (x0+x1) + W1b^T |x0-x1| + b1)      (H, TILE_E)
#   h2 = relu(W2^T h1 + b2)                            (H, TILE_E)
#   prob(class 1) = softmax(logits)[1] = sigmoid((w3[:,1]-w3[:,0])·h2 + b3d)
# Output row is lane-dense (1, TILE_E): no masked vst.msk partial stores.
# -----------------------------------------------------------------------------
def _pairwise_mlp_kernel(x0_ref, x1_ref, w1a_ref, w1b_ref, b1_ref,
                         w2_ref, b2_ref, w3d_ref, b3d_ref, o_ref):
    s = x0_ref[...] + x1_ref[...]                    # (F, TE)
    a = jnp.abs(x0_ref[...] - x1_ref[...])           # (F, TE)
    h = (jnp.dot(w1a_ref[...], s, preferred_element_type=jnp.float32)
         + jnp.dot(w1b_ref[...], a, preferred_element_type=jnp.float32)
         + b1_ref[...])                              # (H, TE)
    h = jnp.maximum(h, 0.0)                          # relu_first
    h = jnp.dot(w2_ref[...], h, preferred_element_type=jnp.float32) + b2_ref[...]
    h = jnp.maximum(h, 0.0)
    logit = jnp.sum(h * w3d_ref[...], axis=0, keepdims=True) + b3d_ref[...]  # (1, TE)
    o_ref[0] = 1.0 / (1.0 + jnp.exp(-logit))         # sigmoid == softmax(.)[1]


def pairwise_mlp(x0T, x1T, w1aT, w1bT, b1, w2T, b2, w3d, b3d, *, tile_e):
    f_dim, e_pad = x0T.shape
    h_dim = w2T.shape[0]
    num_tiles = e_pad // tile_e
    out = pl.pallas_call(
        _pairwise_mlp_kernel,
        out_shape=jax.ShapeDtypeStruct((num_tiles, 1, tile_e), jnp.float32),
        grid=(num_tiles,),
        in_specs=[
            pl.BlockSpec((f_dim, tile_e), lambda i: (0, i)),
            pl.BlockSpec((f_dim, tile_e), lambda i: (0, i)),
            pl.BlockSpec((h_dim, f_dim), lambda i: (0, 0)),
            pl.BlockSpec((h_dim, f_dim), lambda i: (0, 0)),
            pl.BlockSpec((h_dim, 1), lambda i: (0, 0)),
            pl.BlockSpec((h_dim, h_dim), lambda i: (0, 0)),
            pl.BlockSpec((h_dim, 1), lambda i: (0, 0)),
            pl.BlockSpec((h_dim, 1), lambda i: (0, 0)),
            pl.BlockSpec((1, 1), lambda i: (0, 0)),
        ],
        out_specs=pl.BlockSpec((1, 1, tile_e), lambda i: (i, 0, 0)),
        compiler_params=pltpu.CompilerParams(dimension_semantics=("parallel",)),
    )(x0T, x1T, w1aT, w1bT, b1, w2T, b2, w3d, b3d)
    return out.reshape(-1)                           # (e_pad,)


# -----------------------------------------------------------------------------
# Kernel 2: row-panel tiled A_enhanced assembly + row normalization
#   A_enh = alpha*A + (1-alpha)*(mask*(beta*W + (1-beta)*S))  (+ diagonal rule)
#   d = A_enh.sum(1);  M = A_enh / d[:, None]
# Emits M (N, N) and d (N, 1); pi = d / ||d||_1 is finished on host (O(N)).
# -----------------------------------------------------------------------------
def _enhance_kernel(a_ref, mask_ref, w_ref, s_ref, m_ref, d_ref, *,
                    alpha, beta, add_self_loop, block_rows):
    Ae = alpha * a_ref[...] + (1.0 - alpha) * (
        mask_ref[...] * (beta * w_ref[...] + (1.0 - beta) * s_ref[...]))
    rows, n = Ae.shape
    row_g = (jax.lax.broadcasted_iota(jnp.int32, (rows, n), 0)
             + pl.program_id(0) * block_rows)
    col = jax.lax.broadcasted_iota(jnp.int32, (rows, n), 1)
    diag = row_g == col
    if add_self_loop:
        Ae = jnp.where(diag, 1.0, Ae)
    else:
        rs = jnp.sum(Ae, axis=1, keepdims=True)       # includes original diag
        Ae = jnp.where(diag, (rs == 0.0).astype(jnp.float32), Ae)
    d = jnp.sum(Ae, axis=1, keepdims=True)            # (rows, 1)
    d_ref[...] = d
    m_ref[...] = Ae / d


def enhance_and_rownorm(A, mask_f, W, S, *, alpha, beta, add_self_loop):
    n = A.shape[0]
    tm = _pick_sublane_tile(n)
    kernel = functools.partial(
        _enhance_kernel, alpha=float(alpha), beta=float(beta),
        add_self_loop=bool(add_self_loop), block_rows=tm)
    return pl.pallas_call(
        kernel,
        out_shape=(jax.ShapeDtypeStruct((n, n), jnp.float32),
                   jax.ShapeDtypeStruct((n, 1), jnp.float32)),
        grid=(n // tm,),
        in_specs=[pl.BlockSpec((tm, n), lambda i: (i, 0)) for _ in range(4)],
        out_specs=(pl.BlockSpec((tm, n), lambda i: (i, 0)),
                   pl.BlockSpec((tm, 1), lambda i: (i, 0))),
        compiler_params=pltpu.CompilerParams(dimension_semantics=("parallel",)),
    )(A, mask_f, W, S)


# -----------------------------------------------------------------------------
# Kernel 3: standard tiled matmul (for M^k), f32 VMEM accumulator,
# reduction axis last + "arbitrary", row/col axes "parallel" (megacore).
# -----------------------------------------------------------------------------
def _matmul_kernel(a_ref, b_ref, o_ref, acc_ref):
    @pl.when(pl.program_id(2) == 0)
    def _():
        acc_ref[...] = jnp.zeros_like(acc_ref)
    acc_ref[...] += jnp.dot(a_ref[...], b_ref[...],
                            preferred_element_type=jnp.float32)

    @pl.when(pl.program_id(2) == pl.num_programs(2) - 1)
    def _():
        o_ref[...] = acc_ref[...]


def matmul_pallas(a, b):
    m, k = a.shape
    _, n = b.shape
    tm = _pick_sublane_tile(m)
    tk = _pick_lane_tile(k)
    tn = _pick_lane_tile(n)
    return pl.pallas_call(
        _matmul_kernel,
        out_shape=jax.ShapeDtypeStruct((m, n), jnp.float32),
        grid=(m // tm, n // tn, k // tk),
        in_specs=[pl.BlockSpec((tm, tk), lambda i, j, kk: (i, kk)),
                  pl.BlockSpec((tk, tn), lambda i, j, kk: (kk, j))],
        out_specs=pl.BlockSpec((tm, tn), lambda i, j, kk: (i, j)),
        scratch_shapes=[pltpu.VMEM((tm, tn), jnp.float32)],
        compiler_params=pltpu.CompilerParams(
            dimension_semantics=("parallel", "parallel", "arbitrary")),
    )(a, b)


# -----------------------------------------------------------------------------
# Kernel 4: tiled moments of R = diag(pi) @ M^k - outer(pi, pi)
# Accumulates per-lane partial sums of R and R^2 (lane-dense (1, N) outputs);
# R itself never touches HBM.  Final scalar reduce + mean/std finish on host.
# -----------------------------------------------------------------------------
def _ac_moments_kernel(mp_ref, pirow_ref, pit_ref, sum_ref, sq_ref):
    @pl.when(pl.program_id(0) == 0)
    def _():
        sum_ref[...] = jnp.zeros_like(sum_ref)
        sq_ref[...] = jnp.zeros_like(sq_ref)
    r = pirow_ref[...] * (mp_ref[...] - pit_ref[...])      # R row panel
    sum_ref[...] += jnp.sum(r, axis=0, keepdims=True)
    sq_ref[...] += jnp.sum(r * r, axis=0, keepdims=True)


def ac_moments(Mp, pi_col, pi_row):
    n = Mp.shape[0]
    tm = _pick_sublane_tile(n)
    return pl.pallas_call(
        _ac_moments_kernel,
        out_shape=(jax.ShapeDtypeStruct((1, n), jnp.float32),
                   jax.ShapeDtypeStruct((1, n), jnp.float32)),
        grid=(n // tm,),
        in_specs=[pl.BlockSpec((tm, n), lambda i: (i, 0)),
                  pl.BlockSpec((tm, 1), lambda i: (i, 0)),
                  pl.BlockSpec((1, n), lambda i: (0, 0))],
        out_specs=(pl.BlockSpec((1, n), lambda i: (0, 0)),
                   pl.BlockSpec((1, n), lambda i: (0, 0))),
        compiler_params=pltpu.CompilerParams(dimension_semantics=("arbitrary",)),
    )(Mp, pi_col, pi_row)


# -----------------------------------------------------------------------------
# Gelato module (setup & O(E)/O(N) glue in numpy/JAX, hot paths in Pallas)
# -----------------------------------------------------------------------------
class GelatoPallas:

    def __init__(self, A, X, *, eta, alpha, beta, add_self_loop,
                 scaling_parameter, hidden_channels, key, edge_tile=512):
        A = np.asarray(A, np.float32)
        X = np.asarray(X, np.float32)
        self.N, self.Fdim = X.shape
        self.alpha = float(alpha)
        self.beta = float(beta)
        self.add_self_loop = bool(add_self_loop)
        self.scaling_parameter = int(scaling_parameter)
        self.edge_tile = int(edge_tile)

        # pairwise cosine kernel (sklearn pairwise_kernels(metric='cosine'))
        Xn = X / np.maximum(np.linalg.norm(X, axis=1, keepdims=True), 1e-12)
        S = Xn @ Xn.T

        if eta != 0.0:
            num_edges = int((A != 0).sum())
            k = int(np.floor(num_edges * eta))
            np.fill_diagonal(S, 0)
            thr = np.partition(S.flatten(), -k)[-k]
            untrained = S > thr
        else:
            untrained = np.zeros_like(S, dtype=bool)

        aug_mask = (A != 0) | untrained
        self.A = jnp.asarray(A)
        self.X = jnp.asarray(X)
        self.S = jnp.asarray(np.maximum(S * aug_mask, 0.0).astype(np.float32))
        self.mask_f = jnp.asarray(aug_mask.astype(np.float32))
        self.augmented_edges = np.argwhere(np.triu(aug_mask)).astype(np.int32)

        # MLP parameters (permutation_invariant -> in = 2*F, out = 2 classes)
        in_ch = 2 * self.Fdim
        k1, k2, k3 = jax.random.split(key, 3)

        def init_linear(kk, fan_in, fan_out):
            kw, kb = jax.random.split(kk)
            lim = 1.0 / np.sqrt(fan_in)
            w = jax.random.uniform(kw, (fan_in, fan_out), jnp.float32, -lim, lim)
            b = jax.random.uniform(kb, (1, fan_out), jnp.float32, -lim, lim)
            return w, b

        self.w1, self.b1 = init_linear(k1, in_ch, hidden_channels)
        self.w2, self.b2 = init_linear(k2, hidden_channels, hidden_channels)
        self.w3, self.b3 = init_linear(k3, hidden_channels, 2)

        # kernel-layout parameters (transposed; w1 split so concat never exists;
        # layer 3 folded to a single logit difference -> sigmoid)
        F, H = self.Fdim, hidden_channels
        self.w1aT = jnp.asarray(self.w1[:F, :].T)                    # (H, F)
        self.w1bT = jnp.asarray(self.w1[F:, :].T)                    # (H, F)
        self.b1c = jnp.asarray(self.b1.reshape(H, 1))
        self.w2T = jnp.asarray(self.w2.T)                            # (H, H)
        self.b2c = jnp.asarray(self.b2.reshape(H, 1))
        self.w3d = jnp.asarray((self.w3[:, 1] - self.w3[:, 0]).reshape(H, 1))
        self.b3d = jnp.asarray((self.b3[:, 1] - self.b3[:, 0]).reshape(1, 1))

    def forward(self, edges):
        # eval mode: edges_pos ignored, dropout inactive.
        e0 = jnp.asarray(self.augmented_edges[:, 0])
        e1 = jnp.asarray(self.augmented_edges[:, 1])
        E = int(self.augmented_edges.shape[0])
        tile_e = self.edge_tile
        e_pad = max(-(-E // tile_e) * tile_e, tile_e)
        pad = e_pad - E

        # TODO(synk): fuse this X-row gather into the MLP kernel (manual DMA
        # gather) so x0/x1 never round-trip through HBM.
        x0T = jnp.pad(self.X[e0], ((0, pad), (0, 0))).T      # (F, e_pad)
        x1T = jnp.pad(self.X[e1], ((0, pad), (0, 0))).T

        w_all = pairwise_mlp(x0T, x1T, self.w1aT, self.w1bT, self.b1c,
                             self.w2T, self.b2c, self.w3d, self.b3d,
                             tile_e=tile_e)
        w_vals = w_all[:E]          # drop padded tail before scattering into W

        N = self.N
        idx = jnp.arange(N)
        W = jnp.zeros((N, N), jnp.float32).at[e0, e1].set(w_vals)
        W = W + W.T
        W = W.at[idx, idx].set(1.0)

        # A_enhanced -> row-stochastic M and degrees d (tiled Pallas pass)
        M, d = enhance_and_rownorm(self.A, self.mask_f, W, self.S,
                                   alpha=self.alpha, beta=self.beta,
                                   add_self_loop=self.add_self_loop)
        pi = d / jnp.maximum(jnp.sum(jnp.abs(d)), 1e-12)     # F.normalize(d,1,0)

        # M^k via tiled MXU matmuls
        k = self.scaling_parameter
        if k == 0:
            Mp = jnp.eye(N, dtype=jnp.float32)
        else:
            Mp = M
            for _ in range(k - 1):
                Mp = matmul_pallas(Mp, M)

        # mean / std of R without ever materializing R in HBM
        sum_part, sq_part = ac_moments(Mp, pi, pi.reshape(1, N))
        sum_r = jnp.sum(sum_part)
        sum_r2 = jnp.sum(sq_part)
        nn = float(N * N)
        mean = sum_r / nn
        ss = sum_r2 - 2.0 * mean * sum_r + nn * mean * mean
        std = jnp.sqrt(ss / (nn - 1.0))                      # unbiased (torch .std())

        # standardized R only at the queried edge entries (tiny gather)
        q = jnp.asarray(edges)
        qi, qj = q[:, 0], q[:, 1]
        pif = pi[:, 0]
        r_q = pif[qi] * Mp[qi, qj] - pif[qi] * pif[qj]
        return (r_q - mean) / std


# -----------------------------------------------------------------------------
# pure-JAX reference of the PyTorch forward (for correctness check)
# -----------------------------------------------------------------------------
def reference_forward(model, edges):
    hp = jax.lax.Precision.HIGHEST
    X = model.X
    e0 = jnp.asarray(model.augmented_edges[:, 0])
    e1 = jnp.asarray(model.augmented_edges[:, 1])
    edge_x = jnp.concatenate([X[e0] + X[e1], jnp.abs(X[e0] - X[e1])], axis=1)
    h = jnp.maximum(jnp.dot(edge_x, model.w1, precision=hp) + model.b1, 0.0)
    h = jnp.maximum(jnp.dot(h, model.w2, precision=hp) + model.b2, 0.0)
    logits = jnp.dot(h, model.w3, precision=hp) + model.b3
    prob = jax.nn.softmax(logits, axis=-1)[:, 1]
    N = model.N
    idx = jnp.arange(N)
    W = jnp.zeros((N, N), jnp.float32).at[e0, e1].set(prob)
    W = W + W.T
    W = W.at[idx, idx].set(1.0)
    Ae = model.alpha * model.A + (1.0 - model.alpha) * (
        model.mask_f * (model.beta * W + (1.0 - model.beta) * model.S))
    if model.add_self_loop:
        Ae = Ae.at[idx, idx].set(1.0)
    else:
        rs = Ae.sum(axis=1)
        Ae = Ae.at[idx, idx].set((rs == 0.0).astype(jnp.float32))
    d = Ae.sum(axis=1)
    pi = d / jnp.maximum(jnp.sum(jnp.abs(d)), 1e-12)
    M = Ae / d[:, None]
    Mp = jnp.eye(N, dtype=jnp.float32)
    for _ in range(model.scaling_parameter):
        Mp = jnp.dot(Mp, M, precision=hp)
    R = pi[:, None] * Mp - jnp.outer(pi, pi)
    mean = R.mean()
    std = jnp.sqrt(jnp.sum((R - mean) ** 2) / (N * N - 1))
    Rn = (R - mean) / std
    q = jnp.asarray(edges)
    return Rn[q[:, 0], q[:, 1]]


if __name__ == "__main__":
    key = jax.random.PRNGKey(0)
    kA, kX, kE, kP = jax.random.split(key, 4)

    N, F_DIM = 48, 8
    # symmetric binary adjacency, zero diagonal
    Au = (jax.random.uniform(kA, (N, N)) < 0.3).astype(jnp.float32)
    A = jnp.maximum(Au, Au.T) * (1.0 - jnp.eye(N, dtype=jnp.float32))
    X = jax.random.normal(kX, (N, F_DIM), jnp.float32)
    edges = jax.random.randint(kE, (8, 2), 0, N)

    model = GelatoPallas(
        A, X,
        eta=0.0,                # untrained similarity edges disabled (else-branch)
        alpha=0.5, beta=0.5,
        add_self_loop=True,
        scaling_parameter=3,    # Autocovariance markov-time
        hidden_channels=32,
        key=kP,
        edge_tile=512)

    out = model.forward(np.asarray(edges))
    jax.block_until_ready(out)

    ref = reference_forward(model, np.asarray(edges))
    assert out.shape == (8,) and bool(jnp.all(jnp.isfinite(out)))
    np.testing.assert_allclose(np.asarray(out), np.asarray(ref),
                               rtol=1e-2, atol=1e-2)
    print("KERNEL_OK")
</pallas_src>

<mosaic_0001>
module attributes {stable_mosaic.version = 11 : i64} {
  func.func @_pairwise_mlp_kernel(%arg0: i32, %arg1: memref<8x512xf32, #tpu.memory_space<vmem>>, %arg2: memref<8x512xf32, #tpu.memory_space<vmem>>, %arg3: memref<32x8xf32, #tpu.memory_space<vmem>>, %arg4: memref<32x8xf32, #tpu.memory_space<vmem>>, %arg5: memref<32x1xf32, #tpu.memory_space<vmem>>, %arg6: memref<32x32xf32, #tpu.memory_space<vmem>>, %arg7: memref<32x1xf32, #tpu.memory_space<vmem>>, %arg8: memref<32x1xf32, #tpu.memory_space<vmem>>, %arg9: memref<1x1xf32, #tpu.memory_space<vmem>>, %arg10: memref<1x1x512xf32, #tpu.memory_space<vmem>>) attributes {dimension_semantics = [#tpu.dimension_semantics<parallel>], iteration_bounds = array<i64: 2>, scalar_prefetch = 0 : i64, scratch_operands = 0 : i64, tpu.core_type = #tpu.core_type<tc>, window_params = [{transform_indices = @transform_0, window_bounds = array<i64: 8, 512>}, {transform_indices = @transform_1, window_bounds = array<i64: 8, 512>}, {pipeline_mode = #tpu.pipeline_mode<synchronous>, transform_indices = @transform_2, window_bounds = array<i64: 32, 8>}, {pipeline_mode = #tpu.pipeline_mode<synchronous>, transform_indices = @transform_3, window_bounds = array<i64: 32, 8>}, {pipeline_mode = #tpu.pipeline_mode<synchronous>, transform_indices = @transform_4, window_bounds = array<i64: 32, 1>}, {pipeline_mode = #tpu.pipeline_mode<synchronous>, transform_indices = @transform_5, window_bounds = array<i64: 32, 32>}, {pipeline_mode = #tpu.pipeline_mode<synchronous>, transform_indices = @transform_6, window_bounds = array<i64: 32, 1>}, {pipeline_mode = #tpu.pipeline_mode<synchronous>, transform_indices = @transform_7, window_bounds = array<i64: 32, 1>}, {pipeline_mode = #tpu.pipeline_mode<synchronous>, transform_indices = @transform_8, window_bounds = array<i64: 1, 1>}, {transform_indices = @transform_9, window_bounds = array<i64: 1, 1, 512>}]} {
    %c0 = arith.constant 0 : index
    %c0_0 = arith.constant 0 : index
    %0 = vector.load %arg1[%c0, %c0_0] : memref<8x512xf32, #tpu.memory_space<vmem>>, vector<8x512xf32>
    %c0_1 = arith.constant 0 : index
    %c0_2 = arith.constant 0 : index
    %1 = vector.load %arg2[%c0_1, %c0_2] : memref<8x512xf32, #tpu.memory_space<vmem>>, vector<8x512xf32>
    %2 = arith.addf %0, %1 : vector<8x512xf32>
    %c0_3 = arith.constant 0 : index
    %c0_4 = arith.constant 0 : index
    %3 = vector.load %arg1[%c0_3, %c0_4] : memref<8x512xf32, #tpu.memory_space<vmem>>, vector<8x512xf32>
    %c0_5 = arith.constant 0 : index
    %c0_6 = arith.constant 0 : index
    %4 = vector.load %arg2[%c0_5, %c0_6] : memref<8x512xf32, #tpu.memory_space<vmem>>, vector<8x512xf32>
    %5 = arith.subf %3, %4 : vector<8x512xf32>
    %6 = math.absf %5 : vector<8x512xf32>
    %c0_7 = arith.constant 0 : index
    %c0_8 = arith.constant 0 : index
    %7 = vector.load %arg3[%c0_7, %c0_8] : memref<32x8xf32, #tpu.memory_space<vmem>>, vector<32x8xf32>
    %cst = arith.constant dense<0.000000e+00> : vector<32x512xf32>
    %8 = tpu.matmul %7, %2, %cst {dimension_numbers = #tpu.dot_dimension_numbers<[1], [0], [0], [1], [0, 0, 1, 1], [], []>} : vector<32x8xf32>, vector<8x512xf32>, vector<32x512xf32> -> vector<32x512xf32>
    %c0_9 = arith.constant 0 : index
    %c0_10 = arith.constant 0 : index
    %9 = vector.load %arg4[%c0_9, %c0_10] : memref<32x8xf32, #tpu.memory_space<vmem>>, vector<32x8xf32>
    %cst_11 = arith.constant dense<0.000000e+00> : vector<32x512xf32>
    %10 = tpu.matmul %9, %6, %cst_11 {dimension_numbers = #tpu.dot_dimension_numbers<[1], [0], [0], [1], [0, 0, 1, 1], [], []>} : vector<32x8xf32>, vector<8x512xf32>, vector<32x512xf32> -> vector<32x512xf32>
    %11 = arith.addf %8, %10 : vector<32x512xf32>
    %c0_12 = arith.constant 0 : index
    %c0_13 = arith.constant 0 : index
    %12 = vector.load %arg5[%c0_12, %c0_13] : memref<32x1xf32, #tpu.memory_space<vmem>>, vector<32x1xf32>
    %13 = vector.broadcast %12 : vector<32x1xf32> to vector<32x512xf32>
    %14 = arith.addf %11, %13 : vector<32x512xf32>
    %cst_14 = arith.constant 0.000000e+00 : f32
    %15 = vector.broadcast %cst_14 : f32 to vector<32x512xf32>
    %16 = arith.maximumf %14, %15 : vector<32x512xf32>
    %c0_15 = arith.constant 0 : index
    %c0_16 = arith.constant 0 : index
    %17 = vector.load %arg6[%c0_15, %c0_16] : memref<32x32xf32, #tpu.memory_space<vmem>>, vector<32x32xf32>
    %cst_17 = arith.constant dense<0.000000e+00> : vector<32x512xf32>
    %18 = tpu.matmul %17, %16, %cst_17 {dimension_numbers = #tpu.dot_dimension_numbers<[1], [0], [0], [1], [0, 0, 1, 1], [], []>} : vector<32x32xf32>, vector<32x512xf32>, vector<32x512xf32> -> vector<32x512xf32>
    %c0_18 = arith.constant 0 : index
    %c0_19 = arith.constant 0 : index
    %19 = vector.load %arg7[%c0_18, %c0_19] : memref<32x1xf32, #tpu.memory_space<vmem>>, vector<32x1xf32>
    %20 = vector.broadcast %19 : vector<32x1xf32> to vector<32x512xf32>
    %21 = arith.addf %18, %20 : vector<32x512xf32>
    %cst_20 = arith.constant 0.000000e+00 : f32
    %22 = vector.broadcast %cst_20 : f32 to vector<32x512xf32>
    %23 = arith.maximumf %21, %22 : vector<32x512xf32>
    %c0_21 = arith.constant 0 : index
    %c0_22 = arith.constant 0 : index
    %24 = vector.load %arg8[%c0_21, %c0_22] : memref<32x1xf32, #tpu.memory_space<vmem>>, vector<32x1xf32>
    %25 = vector.broadcast %24 : vector<32x1xf32> to vector<32x512xf32>
    %26 = arith.mulf %23, %25 : vector<32x512xf32>
    %cst_23 = arith.constant dense<0.000000e+00> : vector<512xf32>
    %27 = vector.multi_reduction <add>, %26, %cst_23 [0] : vector<32x512xf32> to vector<512xf32>
    %28 = vector.shape_cast %27 : vector<512xf32> to vector<1x512xf32>
    %c0_24 = arith.constant 0 : index
    %c0_25 = arith.constant 0 : index
    %29 = vector.load %arg9[%c0_24, %c0_25] : memref<1x1xf32, #tpu.memory_space<vmem>>, vector<1x1xf32>
    %30 = vector.broadcast %29 : vector<1x1xf32> to vector<1x512xf32>
    %31 = arith.addf %28, %30 : vector<1x512xf32>
    %cst_26 = arith.constant 0.000000e+00 : f32
    %32 = vector.broadcast %cst_26 : f32 to vector<1x512xf32>
    %33 = arith.subf %32, %31 : vector<1x512xf32>
    %34 = math.exp %33 : vector<1x512xf32>
    %cst_27 = arith.constant 1.000000e+00 : f32
    %35 = vector.broadcast %cst_27 : f32 to vector<1x512xf32>
    %36 = arith.addf %35, %34 : vector<1x512xf32>
    %cst_28 = arith.constant 1.000000e+00 : f32
    %37 = vector.broadcast %cst_28 : f32 to vector<1x512xf32>
    %38 = arith.divf %37, %36 : vector<1x512xf32>
    %c0_29 = arith.constant 0 : index
    %c0_30 = arith.constant 0 : index
    %c0_31 = arith.constant 0 : index
    %39 = vector.load %arg10[%c0_29, %c0_30, %c0_31] : memref<1x1x512xf32, #tpu.memory_space<vmem>>, vector<1x1x512xf32>
    %40 = vector.shape_cast %39 : vector<1x1x512xf32> to vector<1x512xf32>
    %41 = vector.shape_cast %38 : vector<1x512xf32> to vector<1x1x512xf32>
    tpu.vector_store %arg10[%c0_29, %c0_30, %c0_31], %41 {strides = array<i32>} : memref<1x1x512xf32, #tpu.memory_space<vmem>>, vector<1x1x512xf32>,
    return
  }
  func.func @transform_0(%arg0: i32) -> (i32, i32) {
    %c0_i32 = arith.constant 0 : i32
    %c0_i32_0 = arith.constant 0 : i32
    return %c0_i32, %arg0 : i32, i32
  }
  func.func @transform_1(%arg0: i32) -> (i32, i32) {
    %c0_i32 = arith.constant 0 : i32
    %c0_i32_0 = arith.constant 0 : i32
    return %c0_i32, %arg0 : i32, i32
  }
  func.func @transform_2(%arg0: i32) -> (i32, i32) {
    %c0_i32 = arith.constant 0 : i32
    %c0_i32_0 = arith.constant 0 : i32
    %c0_i32_1 = arith.constant 0 : i32
    return %c0_i32, %c0_i32_0 : i32, i32
  }
  func.func @transform_3(%arg0: i32) -> (i32, i32) {
    %c0_i32 = arith.constant 0 : i32
    %c0_i32_0 = arith.constant 0 : i32
    %c0_i32_1 = arith.constant 0 : i32
    return %c0_i32, %c0_i32_0 : i32, i32
  }
  func.func @transform_4(%arg0: i32) -> (i32, i32) {
    %c0_i32 = arith.constant 0 : i32
    %c0_i32_0 = arith.constant 0 : i32
    %c0_i32_1 = arith.constant 0 : i32
    return %c0_i32, %c0_i32_0 : i32, i32
  }
  func.func @transform_5(%arg0: i32) -> (i32, i32) {
    %c0_i32 = arith.constant 0 : i32
    %c0_i32_0 = arith.constant 0 : i32
    %c0_i32_1 = arith.constant 0 : i32
    return %c0_i32, %c0_i32_0 : i32, i32
  }
  func.func @transform_6(%arg0: i32) -> (i32, i32) {
    %c0_i32 = arith.constant 0 : i32
    %c0_i32_0 = arith.constant 0 : i32
    %c0_i32_1 = arith.constant 0 : i32
    return %c0_i32, %c0_i32_0 : i32, i32
  }
  func.func @transform_7(%arg0: i32) -> (i32, i32) {
    %c0_i32 = arith.constant 0 : i32
    %c0_i32_0 = arith.constant 0 : i32
    %c0_i32_1 = arith.constant 0 : i32
    return %c0_i32, %c0_i32_0 : i32, i32
  }
  func.func @transform_8(%arg0: i32) -> (i32, i32) {
    %c0_i32 = arith.constant 0 : i32
    %c0_i32_0 = arith.constant 0 : i32
    %c0_i32_1 = arith.constant 0 : i32
    return %c0_i32, %c0_i32_0 : i32, i32
  }
  func.func @transform_9(%arg0: i32) -> (i32, i32, i32) {
    %c0_i32 = arith.constant 0 : i32
    %c0_i32_0 = arith.constant 0 : i32
    %c0_i32_1 = arith.constant 0 : i32
    return %arg0, %c0_i32, %c0_i32_0 : i32, i32, i32
  }
}

</mosaic_0001>

<bundles_post_ra>
// kernel: tpu_custom_call.1
= control target key start
LH: loop header
LB: loop body
LE: loop exit
PB: predicated region body
PF: predicated region fallthrough
CT: control target
= control target key end

     0   :  { %s1767_s0 = inlined_call_operand.vmem [shape: f32[8,1024], index: 0, kind: input, shape index: {}]   ;;  %s1768_s1 = inlined_call_operand.vmem [shape: f32[8,1024], index: 1, kind: input, shape index: {}]   ;;  %s1769_s2 = inlined_call_operand.vmem [shape: f32[32,8], index: 2, kind: input, shape index: {}]   ;;  %s1770_s3 = inlined_call_operand.vmem [shape: f32[32,8], index: 3, kind: input, shape index: {}]   ;;  %s1771_s4 = inlined_call_operand.vmem [shape: f32[32,1], index: 4, kind: input, shape index: {}]   ;;  %s1772_s5 = inlined_call_operand.vmem [shape: f32[32,32], index: 5, kind: input, shape index: {}]   ;;  %s1773_s6 = inlined_call_operand.vmem [shape: f32[32,1], index: 6, kind: input, shape index: {}]   ;;  %s1774_s7 = inlined_call_operand.vmem [shape: f32[32,1], index: 7, kind: input, shape index: {}]   ;;  %s1775_s8 = inlined_call_operand.<no memory space> [shape: f32[1,1], index: 8, kind: input, shape index: {}]   ;;  %s1776_s9 = inlined_call_operand.hbm [shape: f32[2,1,512], index: 9, kind: output, shape index: {}]  }
   0x1   :  { %v14_v0 = vstv %s1775_s8 }
   0x2   :  { %15 = vst [vmem:[#allocation2] sm:$0x1] %v14_v0 }
   0x3   :  { %16 = vsyncpa [#allocation4], 0 }
   0x4   :  { %18 = vsyncpa [#allocation4 + $0x1], 0  ;;  %s1543_s11 = smov 0   ;;  %s1545_s12 = smov 0  }
   0x5   :  { %s1547_s13 = smov 0   ;;  %s1549_s14 = smov 0  }
   0x6 LB: > { %s1564_s8 = sadd.s32 4294967295, %s1484_s14   ;;  %s1291_s15 = sadd.s32 4294967294, %s1484_s14   ;;  %s1484_s14 = sphi %s1549_s14, %s1784_s14   ;;  %s1480_s13 = sphi %s1547_s13, %s1783_s13   ;;  %s1476_s12 = sphi %s1545_s12, %s1782_s12   ;;  %s1472_s11 = sphi %s1543_s11, %s1781_s11  }
   0x7   : > { %s1568_s16 = sadd.s32 1, %s1484_s14   ;;  %s230_s17 = sadd.s32 1, %s1480_s13 }
   0x8   : > { %s227_s18 = ssub.s32 %s1484_s14, %s1568_s16  ;;  %p240_p0 = scmp.ne.s32.totalorder %s1480_s13, %s1476_s12 }
   0x9   : > { %p228_p1 = scmp.eq.s32.totalorder %s227_s18, 0  ;;  %p241_p2 = scmp.eq.s32.totalorder %s1564_s8, 1 }
   0xa   : > { %p246_p3 = scmp.ne.s32.totalorder %s1476_s12, %s1472_s11  ;;  %p247_p4 = scmp.eq.s32.totalorder %s1291_s15, 1 }
   0xb   : > { %s1579_s19 = scalar_select %p228_p1, %s1480_s13, %s230_s17  }
   0xc   : > { %p1581_p5 = por %p241_p2, %p240_p0  ;;  %p1585_p6 = por %p247_p4, %p246_p3 }
   0xd   : > { %1777 = sst [smem:[#allocation6_spill]] %s1579_s19  ;;  %p1294_p7 = scmp.ge.s32.totalorder %s1484_s14, 1 }
   0xe   : > { %p304_p8 = scmp.lt.s32.totalorder %s1484_s14, 3 }
  0x10   : > { %p305_p9 = pnand %p1294_p7, %p304_p8 }
  0x11   : > { %s1296_s22 = sshll.u32 (!%p305_p9), %s1564_s8, 2  ;;  %v1486_v1 = vmov (!%p305_p9), 0.0   ;;  %v1487_v2 = vmov (!%p305_p9), 0   ;;  %v766_v3 = vld [vmem:[%s1771_s4] sm:$0xff] (!%p305_p9)  ;;  %v768_v4 = vld [vmem:[%s1771_s4 + $0x10] sm:$0xff] (!%p305_p9)  ;;  %v767_v5 = vld [vmem:[%s1771_s4 + $0x8] sm:$0xff] (!%p305_p9) }
  0x12   : > { %308 = sbr.rel (%p305_p9) target bundleno = 586 (0x24a), region = 56  ;;  %p346_p10 = scmp.lt.s32.totalorder (!%p305_p9), %s1296_s22, 7  ;;  %462 = vmatprep.mubr.f32.mxu0 (!%p305_p9), %v1486_v1  ;;  %551 = vmatprep.mubr.f32.mxu1 (!%p305_p9), %v1486_v1  ;;  %v769_v6 = vld [vmem:[%s1771_s4 + $0x18] sm:$0xff] (!%p305_p9)  ;;  %v826_v7 = vld [vmem:[%s1773_s6] sm:$0xff] (!%p305_p9)  ;;  %v827_v19 = vld [vmem:[%s1773_s6 + $0x8] sm:$0xff] (!%p305_p9)  ;;  %vm385_vm0 = vcmask (!%p305_p9), 64512  }
  0x13   : > { %1404 = vset.pattern.permute.xlu0 (!%p305_p9), %v1487_v2  ;;  %1405 = vset.pattern.permute.xlu1 (!%p305_p9), %v1487_v2  ;;  %v381_v24 = vld [vmem:[%s1770_s3] sm:$0xff] (!%p305_p9)  ;;  %v382_v30 = vld [vmem:[%s1770_s3 + $0x8] sm:$0xff] (!%p305_p9)  ;;  %v828_v31 = vld [vmem:[%s1773_s6 + $0x10] sm:$0xff] (!%p305_p9)  ;;  %vm850_vm1 = vcmask (!%p305_p9), 261120   ;;  %s342_s23 = sand.u32 (!%p305_p9), 1, %s1476_s12   ;;  %s1329_s25 = sshll.u32 (!%p305_p9), %s1564_s8, 6 }
  0x14   : > { %772 = vperm.xlu0 (!%p305_p9), %1404, %v766_v3   ;;  %782 = vperm.xlu1 (!%p305_p9), %1405, %v768_v4   ;;  %v829_v32 = vld [vmem:[%s1773_s6 + $0x18] sm:$0xff] (!%p305_p9)  ;;  %v383_v33 = vld [vmem:[%s1770_s3 + $0x10] sm:$0xff] (!%p305_p9)  ;;  %v1057_v34 = vld [vmem:[%s1774_s7] sm:$0xff] (!%p305_p9)  ;;  %s1295_s24 = sshll.u32 (!%p305_p9), %s342_s23, 2  ;;  %s1489_s8 = smov (!%p305_p9), [#allocation3]  }
  0x15   : > { %v1058_v35 = vld [vmem:[%s1774_s7 + $0x8] sm:$0xff] (!%p305_p9)  ;;  %v384_v36 = vld [vmem:[%s1770_s3 + $0x18] sm:$0xff] (!%p305_p9)  ;;  %v1059_v37 = vld [vmem:[%s1774_s7 + $0x10] sm:$0xff] (!%p305_p9)  ;;  %s344_s26 = scalar_lea.vmem (!%p305_p9), [#allocation3], %s1295_s24  ;;  %s1426_s10 = sshll.u32 (!%p305_p9), %s1489_s8, 4  ;;  %s1427_s10 = int_to_ptr.vmem [resolvable:$false] %s1426_s10 }
  0x16   : > { %v1060_v38 = vld [vmem:[%s1774_s7 + $0x18] sm:$0xff] (!%p305_p9)  ;;  %v377_v39 = vld [vmem:[%s1769_s2] sm:$0xff] (!%p305_p9)  ;;  %v378_v41 = vld [vmem:[%s1769_s2 + $0x8] sm:$0xff] (!%p305_p9)  ;;  %s1428_s15 = scalar_lea.vmem (!%p305_p9), %s1427_s10, 128 }
  0x17   : > { %v1133_v40 = vld [vmem:[#allocation2] sm:$0x1] (!%p305_p9)  ;;  %v379_v42 = vld [vmem:[%s1769_s2 + $0x10] sm:$0xff] (!%p305_p9)  ;;  %v380_v43 = vld [vmem:[%s1769_s2 + $0x18] sm:$0xff] (!%p305_p9) }
  0x18   : > { %777 = vperm.xlu0 (!%p305_p9), %1404, %v767_v5   ;;  %787 = vperm.xlu1 (!%p305_p9), %1405, %v769_v6  }
  0x19   : > { %s1786_s22 = smov (!%p346_p10, %s1296_s22), 7 }
  0x1a   : > { %s1297_s29 = sshll.u32 %s1786_s22, 3  ;;  %s1220_s22 = sshll.u32 %s344_s26, 4  ;;  %s1727_s22 = int_to_ptr.vmem [resolvable:$true] %s1220_s22 }
  0x1b   : > { %s349_s18 = scalar_lea.vmem %s1767_s0, %s1297_s29  ;;  %s355_s19 = scalar_lea.vmem %s1768_s1, %s1297_s29 }
  0x1c   : > { %v358_v8 = vld [vmem:[%s349_s18 + $0x8] sm:$0xff]  ;;  %v360_v10 = vld [vmem:[%s349_s18 + $0x18] sm:$0xff]  ;;  %v357_v13 = vld [vmem:[%s349_s18] sm:$0xff]  ;;  %832 = vperm.xlu0 %1404, %v826_v7   ;;  %837 = vperm.xlu1 %1405, %v827_v19   ;;  %s1725_s29 = scalar_lea.hbm %s1776_s9, %s1329_s25  ;;  %s1422_s30 = scalar_lea.vmem %s1727_s22, 64 }
  0x1d   : > { %v362_v9 = vld [vmem:[%s355_s19 + $0x8] sm:$0xff]  ;;  %v364_v12 = vld [vmem:[%s355_s19 + $0x18] sm:$0xff]  ;;  %v361_v14 = vld [vmem:[%s355_s19] sm:$0xff]  ;;  %p1423_p11 = scmp.ne.s32.totalorder %s1727_s22, %s1422_s30  ;;  %p1429_p0 = scmp.lt.s32.totalorder %s1727_s22, %s1427_s10 }
  0x1e   : > { %v370_v11 = vsub.f32 %v358_v8, %v362_v9  ;;  %v372_v15 = vsub.f32 %v360_v10, %v364_v12  ;;  %v369_v16 = vsub.f32 %v357_v13, %v361_v14  ;;  %v359_v17 = vld [vmem:[%s349_s18 + $0x10] sm:$0xff]  ;;  %v366_v25 = vadd.f32 %v362_v9, %v358_v8  ;;  %p1430_p1 = scmp.lt.s32.totalorder %s1428_s15, %s1422_s30 }
  0x1f   : > { %v363_v18 = vld [vmem:[%s355_s19 + $0x10] sm:$0xff]  ;;  %v368_v27 = vadd.f32 %v364_v12, %v360_v10  ;;  %v365_v28 = vadd.f32 %v361_v14, %v357_v13  ;;  %s1206_s19 = scalar_lea.sflag [#allocation4], %s342_s23  ;;  %p1424_p12 = pnand %p1423_p11, %p1581_p5 }
  0x20   : > { %v374_v20 = vand.u32 2147483647, %v370_v11  ;;  %v371_v21 = vsub.f32 %v359_v17, %v363_v18  ;;  %v376_v22 = vand.u32 2147483647, %v372_v15  ;;  %v373_v23 = vand.u32 2147483647, %v369_v16  ;;  %842 = vperm.xlu0 %1404, %v828_v31   ;;  %847 = vperm.xlu1 %1405, %v829_v32   ;;  %p1431_p2 = por %p1430_p1, %p1429_p0 }
  0x21   : > { %v367_v29 = vadd.f32 %v363_v18, %v359_v17  ;;  %p1425_p13 = pneg %p1424_p12 }
  0x22   : > { %398 = vmatprep.subr.mxu0 %v374_v20  ;;  %v375_v26 = vand.u32 2147483647, %v371_v21  ;;  %487 = vmatprep.subr.mxu1 %v376_v22 }
  0x23   : > { %399 = vmatpush1.msra.mxu0 %v373_v23  ;;  %p1432_p3 = pnand %p1431_p2, %p1425_p13 }
  0x24   : > { %488 = vmatpush1.msra.mxu1 %v375_v26  ;;  %1300 = vmatmul.mubr.msk.f32.vlgmr.msra.gmra.mrb[0].mxu0 %vm385_vm0, %v381_v24 }
  0x25   : > { %1304 = vmatmul.mubr.msk.f32.vlgmr.msra.gmra.mrb[0].mxu1 %vm385_vm0, %v381_v24  ;;  %468 = vmatprep.mubr.f32.mxu0 %v1486_v1 }
  0x26   : > { %557 = vmatprep.mubr.f32.mxu1 %v1486_v1  ;;  %588 = vmatprep.subr.mxu0 %v366_v25 }
  0x27   : > { %677 = vmatprep.subr.mxu1 %v368_v27  ;;  %589 = vmatpush1.msra.mxu0 %v365_v28 }
  0x28   : > { %1301 = vmatmul.mubr.msk.f32.gmra.mrb[2].mxu0 %vm385_vm0, %v382_v30  ;;  %678 = vmatpush1.msra.mxu1 %v367_v29 }
  0x29   : > { %1305 = vmatmul.mubr.msk.f32.gmra.mrb[2].mxu1 %vm385_vm0, %v382_v30  ;;  %474 = vmatprep.mubr.f32.mxu0 %v1486_v1 }
  0x2a   : > { %563 = vmatprep.mubr.f32.mxu1 %v1486_v1  ;;  %1063 = vperm.xlu0 %1404, %v1057_v34  }
  0x2b   : > { %1068 = vperm.xlu1 %1405, %v1058_v35  }
  0x2c   : > { %1302 = vmatmul.mubr.msk.f32.gmra.mrb[4].mxu0 %vm385_vm0, %v383_v33 }
  0x2d   : > { %1306 = vmatmul.mubr.msk.f32.gmra.mrb[4].mxu1 %vm385_vm0, %v383_v33  ;;  %480 = vmatprep.mubr.f32.mxu0 %v1486_v1 }
  0x2e   : > { %569 = vmatprep.mubr.f32.mxu1 %v1486_v1  ;;  %1073 = vperm.xlu0 %1404, %v1059_v37  }
  0x2f   : > { %1078 = vperm.xlu1 %1405, %v1060_v38  }
  0x30   : > { %1303 = vmatmul.mubr.msk.f32.gmra.mrb[6].mxu0 %vm385_vm0, %v384_v36 }
  0x31   : > { %1307 = vmatmul.mubr.msk.f32.gmra.mrb[6].mxu1 %vm385_vm0, %v384_v36  ;;  %652 = vmatprep.mubr.f32.mxu0 %v1486_v1 }
  0x32   : > { %741 = vmatprep.mubr.f32.mxu1 %v1486_v1  ;;  %1136 = vperm.xlu0 %1404, %v1133_v40  }
  0x34   : > { %1308 = vmatmul.mubr.msk.f32.vlgmr.msra.gmra.mrb[0].mxu0 %vm385_vm0, %v377_v39 }
  0x35   : > { %1312 = vmatmul.mubr.msk.f32.vlgmr.msra.gmra.mrb[0].mxu1 %vm385_vm0, %v377_v39  ;;  %658 = vmatprep.mubr.f32.mxu0 %v1486_v1 }
  0x36   : > { %747 = vmatprep.mubr.f32.mxu1 %v1486_v1 }
  0x38   : > { %1309 = vmatmul.mubr.msk.f32.gmra.mrb[2].mxu0 %vm385_vm0, %v378_v41 }
  0x39   : > { %1313 = vmatmul.mubr.msk.f32.gmra.mrb[2].mxu1 %vm385_vm0, %v378_v41  ;;  %664 = vmatprep.mubr.f32.mxu0 %v1486_v1  ;;  %v822_v41 = vld [vmem:[%s1772_s5] sm:$0xff] }
  0x3a   : > { %753 = vmatprep.mubr.f32.mxu1 %v1486_v1 }
  0x3c   : > { %1310 = vmatmul.mubr.msk.f32.gmra.mrb[4].mxu0 %vm385_vm0, %v379_v42 }
  0x3d   : > { %1314 = vmatmul.mubr.msk.f32.gmra.mrb[4].mxu1 %vm385_vm0, %v379_v42  ;;  %670 = vmatprep.mubr.f32.mxu0 %v1486_v1  ;;  %v823_v42 = vld [vmem:[%s1772_s5 + $0x8] sm:$0xff] }
  0x3e   : > { %759 = vmatprep.mubr.f32.mxu1 %v1486_v1 }
  0x40   : > { %1311 = vmatmul.mubr.msk.f32.gmra.mrb[6].mxu0 %vm385_vm0, %v380_v43 }
  0x41   : > { %1315 = vmatmul.mubr.msk.f32.gmra.mrb[6].mxu1 %vm385_vm0, %v380_v43  ;;  %927 = vmatprep.mubr.f32.mxu0 %v1486_v1  ;;  %v824_v43 = vld [vmem:[%s1772_s5 + $0x10] sm:$0xff] }
  0x42   : > { %1016 = vmatprep.mubr.f32.mxu1 %v1486_v1 }
  0x93   : > { %v773_v44 = vpop.permute.xlu0 %772  ;;  %v783_v58 = vpop.permute.xlu1 %782 }
  0x97   : > { %v778_v50 = vpop.permute.xlu0 %777  ;;  %v788_v17 = vpop.permute.xlu1 %787 }
 0x107   : > { %v654_v45 = vpop.f32.mrb[0].mxu0 }
 0x108   : > { %v743_v46 = vpop.f32.mrb[0].mxu1  ;;  %v656_v47 = vpop.f32.mrb[1].mxu0  ;;  %v790_v49 = vadd.f32 %v773_v44, %v654_v45 }
 0x109   : > { %v745_v48 = vpop.f32.mrb[1].mxu1  ;;  %v792_v51 = vadd.f32 %v773_v44, %v743_v46  ;;  %v791_v52 = vadd.f32 %v773_v44, %v656_v47  ;;  %v833_v45 = vpop.permute.xlu0 %832 }
 0x10a   : > { %v793_v54 = vadd.f32 %v773_v44, %v745_v48  ;;  %v806_v62 = vmax.f32 %v790_v49, 0.0  ;;  %v825_v44 = vld [vmem:[%s1772_s5 + $0x18] sm:$0xff]  ;;  %v838_v46 = vpop.permute.xlu1 %837 }
 0x10b   : > { %v660_v53 = vpop.f32.mrb[2].mxu0  ;;  %v808_v2 = vmax.f32 %v792_v51, 0.0  ;;  %v807_v3 = vmax.f32 %v791_v52, 0.0 }
 0x10c   : > { %v794_v55 = vadd.f32 %v778_v50, %v660_v53  ;;  %v749_v56 = vpop.f32.mrb[2].mxu1  ;;  %v662_v57 = vpop.f32.mrb[3].mxu0  ;;  %v809_v7 = vmax.f32 %v793_v54, 0.0 }
 0x10d   : > { %v796_v59 = vadd.f32 %v778_v50, %v749_v56  ;;  %v795_v60 = vadd.f32 %v778_v50, %v662_v57  ;;  %v751_v61 = vpop.f32.mrb[3].mxu1  ;;  %v843_v47 = vpop.permute.xlu0 %842 }
 0x10e   : > { %v810_v63 = vmax.f32 %v794_v55, 0.0  ;;  %v797_v0 = vadd.f32 %v778_v50, %v751_v61  ;;  %v848_v52 = vpop.permute.xlu1 %847 }
 0x10f   : > { %v812_v4 = vmax.f32 %v796_v59, 0.0  ;;  %v811_v5 = vmax.f32 %v795_v60, 0.0  ;;  %v666_v6 = vpop.f32.mrb[4].mxu0 }
 0x110   : > { %v1332_v8 = vpack.c.bf16 %v810_v63, %v806_v62  ;;  %v813_v9 = vmax.f32 %v797_v0, 0.0  ;;  %v755_v10 = vpop.f32.mrb[4].mxu1  ;;  %v668_v11 = vpop.f32.mrb[5].mxu0  ;;  %v798_v16 = vadd.f32 %v783_v58, %v666_v6 }
 0x111   : > { %v1340_v12 = vpack.c.bf16 %v812_v4, %v808_v2  ;;  %v1330_v13 = vpack.c.bf16 %v811_v5, %v807_v3  ;;  %v757_v14 = vpop.f32.mrb[5].mxu1  ;;  %v800_v18 = vadd.f32 %v783_v58, %v755_v10  ;;  %v799_v19 = vadd.f32 %v783_v58, %v668_v11  ;;  %v1064_v0 = vpop.permute.xlu0 %1063 }
 0x112   : > { %v1338_v15 = vpack.c.bf16 %v813_v9, %v809_v7  ;;  %v801_v21 = vadd.f32 %v783_v58, %v757_v14  ;;  %v814_v28 = vmax.f32 %v798_v16, 0.0 }
 0x113   : > { %v672_v20 = vpop.f32.mrb[6].mxu0  ;;  %1331 = vmatprep.subr.bf16.mxu0 %v1330_v13  ;;  %v816_v31 = vmax.f32 %v800_v18, 0.0  ;;  %v815_v32 = vmax.f32 %v799_v19, 0.0 }
 0x114   : > { %v802_v22 = vadd.f32 %v788_v17, %v672_v20  ;;  %v761_v23 = vpop.f32.mrb[6].mxu1  ;;  %1339 = vmatprep.subr.bf16.mxu1 %v1338_v15  ;;  %v674_v24 = vpop.f32.mrb[7].mxu0  ;;  %1333 = vmatpush1.bf16.msra.mxu0 %v1332_v8  ;;  %v817_v35 = vmax.f32 %v801_v21, 0.0 }
 0x115   : > { %v804_v25 = vadd.f32 %v788_v17, %v761_v23  ;;  %v803_v26 = vadd.f32 %v788_v17, %v674_v24  ;;  %v763_v27 = vpop.f32.mrb[7].mxu1  ;;  %1341 = vmatpush1.bf16.msra.mxu1 %v1340_v12  ;;  %v1069_v8 = vpop.permute.xlu1 %1068 }
 0x116   : > { %v818_v29 = vmax.f32 %v802_v22, 0.0  ;;  %v805_v30 = vadd.f32 %v788_v17, %v763_v27 }
 0x117   : > { %v820_v33 = vmax.f32 %v804_v25, 0.0  ;;  %v819_v34 = vmax.f32 %v803_v26, 0.0 }
 0x118   : > { %v1336_v36 = vpack.c.bf16 %v818_v29, %v814_v28  ;;  %v821_v37 = vmax.f32 %v805_v30, 0.0  ;;  %v1074_v29 = vpop.permute.xlu0 %1073 }
 0x119   : > { %v1344_v38 = vpack.c.bf16 %v820_v33, %v816_v31  ;;  %v1334_v39 = vpack.c.bf16 %v819_v34, %v815_v32 }
 0x11a   : > { %v1342_v40 = vpack.c.bf16 %v821_v37, %v817_v35 }
 0x11b   : > { %1335 = vmatprep.subr.bf16.mxu0 %v1334_v39 }
 0x11c   : > { %1343 = vmatprep.subr.bf16.mxu1 %v1342_v40  ;;  %1337 = vmatpush1.bf16.msra.mxu0 %v1336_v36 }
 0x11d   : > { %1345 = vmatpush1.bf16.msra.mxu1 %v1344_v38 }
 0x11f   : > { %1316 = vmatmul.mubr.msk.f32.vlgmr.msra.gmra.mrb[8].mxu0 %vm850_vm1, %v822_v41 }
 0x120   : > { %1320 = vmatmul.mubr.msk.f32.vlgmr.msra.gmra.mrb[8].mxu1 %vm850_vm1, %v822_v41  ;;  %933 = vmatprep.mubr.f32.mxu0 %v1486_v1 }
 0x121   : > { %1022 = vmatprep.mubr.f32.mxu1 %v1486_v1 }
 0x123   : > { %1317 = vmatmul.mubr.msk.f32.gmra.mrb[10].mxu0 %vm850_vm1, %v823_v42 }
 0x124   : > { %1321 = vmatmul.mubr.msk.f32.gmra.mrb[10].mxu1 %vm850_vm1, %v823_v42  ;;  %939 = vmatprep.mubr.f32.mxu0 %v1486_v1 }
 0x125   : > { %1028 = vmatprep.mubr.f32.mxu1 %v1486_v1 }
 0x127   : > { %1318 = vmatmul.mubr.msk.f32.gmra.mrb[12].mxu0 %vm850_vm1, %v824_v43 }
 0x128   : > { %1322 = vmatmul.mubr.msk.f32.gmra.mrb[12].mxu1 %vm850_vm1, %v824_v43  ;;  %945 = vmatprep.mubr.f32.mxu0 %v1486_v1 }
 0x129   : > { %1034 = vmatprep.mubr.f32.mxu1 %v1486_v1 }
 0x12b   : > { %1319 = vmatmul.mubr.msk.f32.gmra.mrb[14].mxu0 %vm850_vm1, %v825_v44 }
 0x12c   : > { %1323 = vmatmul.mubr.msk.f32.gmra.mrb[14].mxu1 %vm850_vm1, %v825_v44 }
 0x1f2   : > { %v929_v48 = vpop.f32.mrb[8].mxu0 }
 0x1f3   : > { %v930_v49 = vadd.f32 %v929_v48, %v833_v45  ;;  %v1018_v50 = vpop.f32.mrb[8].mxu1  ;;  %v931_v51 = vpop.f32.mrb[9].mxu0 }
 0x1f4   : > { %v1019_v53 = vadd.f32 %v1018_v50, %v833_v45  ;;  %v932_v54 = vadd.f32 %v931_v51, %v833_v45  ;;  %v1020_v55 = vpop.f32.mrb[9].mxu1  ;;  %v1079_v50 = vpop.permute.xlu1 %1078 }
 0x1f5   : > { %v1041_v56 = vmax.f32 %v930_v49, 0.0  ;;  %v1021_v57 = vadd.f32 %v1020_v55, %v833_v45 }
 0x1f6   : > { %v1043_v58 = vmax.f32 %v1019_v53, 0.0  ;;  %v1042_v59 = vmax.f32 %v932_v54, 0.0  ;;  %v935_v1 = vpop.f32.mrb[10].mxu0 }
 0x1f7   : > { %v1044_v60 = vmax.f32 %v1021_v57, 0.0  ;;  %v936_v61 = vadd.f32 %v935_v1, %v838_v46  ;;  %v1024_v62 = vpop.f32.mrb[10].mxu1  ;;  %v937_v63 = vpop.f32.mrb[11].mxu0  ;;  %v1081_v5 = vmul.f32 %v1064_v0, %v1041_v56 }
 0x1f8   : > { %v1025_v2 = vadd.f32 %v1024_v62, %v838_v46  ;;  %v938_v3 = vadd.f32 %v937_v63, %v838_v46  ;;  %v1026_v4 = vpop.f32.mrb[11].mxu1  ;;  %v1083_v9 = vmul.f32 %v1064_v0, %v1043_v58  ;;  %v1082_v10 = vmul.f32 %v1064_v0, %v1042_v59 }
 0x1f9   : > { %v1045_v6 = vmax.f32 %v936_v61, 0.0  ;;  %v1027_v7 = vadd.f32 %v1026_v4, %v838_v46  ;;  %v1084_v14 = vmul.f32 %v1064_v0, %v1044_v60  ;;  %v1139_v60 = vlaneseq }
 0x1fa   : > { %v1047_v11 = vmax.f32 %v1025_v2, 0.0  ;;  %v1046_v12 = vmax.f32 %v938_v3, 0.0  ;;  %v941_v13 = vpop.f32.mrb[12].mxu0 }
 0x1fb   : > { %v1085_v15 = vmul.f32 %v1069_v8, %v1045_v6  ;;  %v1048_v16 = vmax.f32 %v1027_v7, 0.0  ;;  %v942_v17 = vadd.f32 %v941_v13, %v843_v47  ;;  %v1030_v18 = vpop.f32.mrb[12].mxu1  ;;  %v943_v19 = vpop.f32.mrb[13].mxu0  ;;  %vm1202_vm2 = vcmp.lt.s32.totalorder %v1139_v60, 512 }
 0x1fc   : > { %v1087_v20 = vmul.f32 %v1069_v8, %v1047_v11  ;;  %v1086_v21 = vmul.f32 %v1069_v8, %v1046_v12  ;;  %v1031_v22 = vadd.f32 %v1030_v18, %v843_v47  ;;  %v944_v23 = vadd.f32 %v943_v19, %v843_v47  ;;  %v1032_v24 = vpop.f32.mrb[13].mxu1 }
 0x1fd   : > { %v1097_v25 = vadd.f32 %v1085_v15, %v1081_v5  ;;  %v1088_v26 = vmul.f32 %v1069_v8, %v1048_v16  ;;  %v1049_v27 = vmax.f32 %v942_v17, 0.0  ;;  %v1033_v28 = vadd.f32 %v1032_v24, %v843_v47  ;;  %v1137_v17 = vpop.permute.xlu0 %1136 }
 0x1fe   : > { %v1115_v30 = vadd.f32 %v1087_v20, %v1083_v9  ;;  %v1106_v31 = vadd.f32 %v1086_v21, %v1082_v10  ;;  %v1051_v32 = vmax.f32 %v1031_v22, 0.0  ;;  %v1050_v33 = vmax.f32 %v944_v23, 0.0  ;;  %v947_v34 = vpop.f32.mrb[14].mxu0 }
 0x1ff   : > { %v1124_v35 = vadd.f32 %v1088_v26, %v1084_v14  ;;  %v1089_v36 = vmul.f32 %v1074_v29, %v1049_v27  ;;  %v1052_v37 = vmax.f32 %v1033_v28, 0.0  ;;  %v948_v38 = vadd.f32 %v947_v34, %v848_v52  ;;  %v1036_v39 = vpop.f32.mrb[14].mxu1  ;;  %v949_v40 = vpop.f32.mrb[15].mxu0 }
 0x200   : > { %v1091_v41 = vmul.f32 %v1074_v29, %v1051_v32  ;;  %v1090_v42 = vmul.f32 %v1074_v29, %v1050_v33  ;;  %v1037_v43 = vadd.f32 %v1036_v39, %v848_v52  ;;  %v950_v44 = vadd.f32 %v949_v40, %v848_v52  ;;  %v1038_v45 = vpop.f32.mrb[15].mxu1 }
 0x201   : > { %v1098_v46 = vadd.f32 %v1097_v25, %v1089_v36  ;;  %v1092_v48 = vmul.f32 %v1074_v29, %v1052_v37  ;;  %v1053_v47 = vmax.f32 %v948_v38, 0.0  ;;  %v1039_v49 = vadd.f32 %v1038_v45, %v848_v52 }
 0x202   : > { %v1116_v51 = vadd.f32 %v1115_v30, %v1091_v41  ;;  %v1107_v53 = vadd.f32 %v1106_v31, %v1090_v42  ;;  %v1055_v54 = vmax.f32 %v1037_v43, 0.0  ;;  %v1054_v55 = vmax.f32 %v950_v44, 0.0 }
 0x203   : > { %v1125_v56 = vadd.f32 %v1124_v35, %v1092_v48  ;;  %v1093_v57 = vmul.f32 %v1079_v50, %v1053_v47  ;;  %v1056_v58 = vmax.f32 %v1039_v49, 0.0  ;;  %v1140_v52 = vshrl.u32 %v1139_v60, 7 }
 0x204   : > { %v1095_v59 = vmul.f32 %v1079_v50, %v1055_v54  ;;  %v1094_v1 = vmul.f32 %v1079_v50, %v1054_v55 }
 0x205   : > { %v1099_v61 = vadd.f32 %v1098_v46, %v1093_v57  ;;  %v1096_v62 = vmul.f32 %v1079_v50, %v1056_v58  ;;  %v1141_v14 = vsub.s32 0, %v1140_v52  ;;  %v1488_v50 = vmov 1966171168  }
 0x206   : > { %v1117_v63 = vadd.f32 %v1116_v51, %v1095_v59  ;;  %v1108_v0 = vadd.f32 %v1107_v53, %v1094_v1  ;;  %v1178_v51 = vunpack.c.l.s4 %v1488_v50 }
 0x207   : > { %v1100_v2 = vrot.slane %v1099_v61, 4  ;;  %v1126_v3 = vadd.f32 %v1125_v56, %v1096_v62  ;;  %v1142_v24 = vrot.slane %v1137_v17, %v1141_v14 }
 0x208   : > { %v1118_v4 = vrot.slane %v1117_v63, 4  ;;  %v1109_v5 = vrot.slane %v1108_v0, 4  ;;  %v1179_v53 = vunpack.c.0.s8 %v1178_v51 }
 0x209   : > { %v1101_v6 = vadd.f32 %v1100_v2, %v1099_v61  ;;  %v1127_v7 = vrot.slane %v1126_v3, 4 }
 0x20a   : > { %v1119_v8 = vadd.f32 %v1118_v4, %v1117_v63  ;;  %v1110_v9 = vadd.f32 %v1109_v5, %v1108_v0  ;;  %v1182_v56 = vsub.s32 %v1179_v53, %v1140_v52 }
 0x20b   : > { %v1102_v10 = vrot.slane %v1101_v6, 2  ;;  %v1128_v11 = vadd.f32 %v1127_v7, %v1126_v3 }
 0x20c   : > { %v1120_v12 = vrot.slane %v1119_v8, 2  ;;  %v1111_v13 = vrot.slane %v1110_v9, 2 }
 0x20d   : > { %v1103_v15 = vadd.f32 %v1102_v10, %v1101_v6  ;;  %v1129_v16 = vrot.slane %v1128_v11, 2 }
 0x20e   : > { %v1121_v18 = vadd.f32 %v1120_v12, %v1119_v8  ;;  %v1112_v19 = vadd.f32 %v1111_v13, %v1110_v9 }
 0x20f   : > { %v1104_v20 = vrot.slane %v1103_v15, 1  ;;  %v1130_v21 = vadd.f32 %v1129_v16, %v1128_v11 }
 0x210   : > { %v1122_v22 = vrot.slane %v1121_v18, 1  ;;  %v1113_v23 = vrot.slane %v1112_v19, 1 }
 0x211   : > { %v1105_v25 = vadd.f32 %v1104_v20, %v1103_v15  ;;  %v1131_v26 = vrot.slane %v1130_v21, 1 }
 0x212   : > { %v1123_v27 = vadd.f32 %v1122_v22, %v1121_v18  ;;  %v1114_v28 = vadd.f32 %v1113_v23, %v1112_v19 }
 0x213   : > { %v1143_v29 = vadd.f32 %v1142_v24, %v1105_v25  ;;  %v1132_v30 = vadd.f32 %v1131_v26, %v1130_v21 }
 0x214   : > { %v1145_v31 = vadd.f32 %v1142_v24, %v1123_v27  ;;  %v1144_v32 = vadd.f32 %v1142_v24, %v1114_v28 }
 0x215   : > { %v1147_v33 = vsub.f32 0.0, %v1143_v29  ;;  %v1146_v34 = vadd.f32 %v1142_v24, %v1132_v30 }
 0x216   : > { %v1149_v35 = vsub.f32 0.0, %v1145_v31  ;;  %v1148_v36 = vsub.f32 0.0, %v1144_v32 }
 0x217   : > { %v1151_v37 = vmul.f32 1.442695, %v1147_v33  ;;  %v1150_v38 = vsub.f32 0.0, %v1146_v34 }
 0x218   : > { %v1155_v39 = vmul.f32 1.442695, %v1149_v35  ;;  %v1153_v40 = vmul.f32 1.442695, %v1148_v36 }
 0x219   : > { %1406 = vpow2.f32 %v1151_v37  ;;  %v1157_v41 = vmul.f32 1.442695, %v1150_v38 }
 0x21a   : > { %1408 = vpow2.f32 %v1155_v39 }
 0x21b   : > { %1410 = vpow2.f32 %v1153_v40 }
 0x21c   : > { %1412 = vpow2.f32 %v1157_v41 }
 0x223   : > { %v1407_v42 = vpop.eup %1406 }
 0x224   : > { %v1409_v43 = vpop.eup %1408  ;;  %v1159_v44 = vadd.f32 1.0, %v1407_v42 }
 0x225   : > { %v1411_v45 = vpop.eup %1410  ;;  %v1161_v46 = vadd.f32 1.0, %v1409_v43 }
 0x226   : > { %v1413_v48 = vpop.eup %1412  ;;  %1414 = vrcp.f32 %v1159_v44  ;;  %v1160_v47 = vadd.f32 1.0, %v1411_v45 }
 0x227   : > { %1416 = vrcp.f32 %v1161_v46  ;;  %v1162_v49 = vadd.f32 1.0, %v1413_v48 }
 0x228   : > { %1418 = vrcp.f32 %v1160_v47 }
 0x229   : > { %1420 = vrcp.f32 %v1162_v49 }
 0x230   : > { %v1415_v54 = vpop.eup %1414 }
 0x231   : > { %v1417_v55 = vpop.eup %1416 }
 0x232   : > { %v1419_v57 = vpop.eup %1418 }
 0x233   : > { %v1421_v58 = vpop.eup %1420  ;;  %v1175_v59 = vcombine.low %v1415_v54, %v1419_v57 }
 0x234   : > { %v1176_v1 = vcombine.low %v1417_v55, %v1421_v58 }
 0x235   : > { %v1183_v61 = vrot.slane %v1175_v59, %v1182_v56 }
 0x236   : > { %v1190_v62 = vrot.slane %v1176_v1, %v1182_v56 }
 0x238   : > { %v1191_v63 = vcombine.low %v1183_v61, %v1190_v62 }
 0x23a   : > { %v1198_v0 = vrot.slane %v1191_v63, %v1182_v56 }
 0x23c   : > { %1204 = vst.msk [vmem:[%s344_s26] sm:$0xf] %vm1202_vm2, %v1198_v0 }
 0x23d   : > { %1435 = shalt.err (!%p1432_p3)
}
 0x23e   : > { %s1436_s17 = scalar_lea.hbm %s1725_s29, 64  ;;  %s1440_s24 = scalar_lea.hbm %s1776_s9, 128 }
 0x23f   : > { %p1437_p4 = scmp.ne.s32.totalorder %s1725_s29, %s1436_s17  ;;  %p1441_p9 = scmp.lt.u32.totalorder %s1725_s29, %s1776_s9 }
 0x240   : > { %p1442_p10 = scmp.lt.u32.totalorder %s1440_s24, %s1436_s17  ;;  %p1444_p12 = scmp.lt.u32.totalorder %s1436_s17, %s1725_s29 }
 0x241   : > { %p1438_p7 = pnand %p1437_p4, %p1581_p5 }
 0x242   : > { %p1443_p11 = por %p1442_p10, %p1441_p9 }
 0x243   : > { %p1439_p8 = pneg %p1438_p7 }
 0x244   : > { %p1445_p13 = por %p1444_p12, %p1443_p11 }
 0x246   : > { %p1446_p0 = pnand %p1445_p13, %p1439_p8 }
 0x248   : > { %1449 = shalt.err (!%p1446_p0)
}
 0x249   : > { %1362 = dma.vmem_to_hbm [thread:$0]  (%p1581_p5), %s1727_s22, 64, %s1725_s29, %s1206_s19  }
 0x24a PF: > { %p1368_p1 = scmp.ge.s32.totalorder %s1484_s14, 2  ;;  %s1232_s27 = sand.u32 1, %s1472_s11  }
 0x24b   : > { %s1233_s28 = scalar_lea.sflag [#allocation4], %s1232_s27 }
 0x24c   : > { %p1365_p2 = pnand %p1368_p1, %p1585_p6 }
 0x24e   : > { %1467 = dma.done.wait (!%p1365_p2), %s1233_s28, 64  }
 0x24f   : > { %1469 = vsyncadd (!%p1365_p2), %s1233_s28, 4294967232  ;;  %s1780_s30 = sld [smem:[#allocation6_spill]]  ;;  %p21_p3 = scmp.ge.s32.totalorder %s1568_s16, 4  }
 0x250   : > { %s1781_s11 = smov %s1476_s12  ;;  %s1782_s12 = smov %s1480_s13 }
 0x251   : > { %s1784_s14 = smov %s1568_s16  ;;  %23 = sbr.rel (!%p21_p3) target bundleno = 6 (0x6), region = 94 }
 0x255   : > { %s1783_s13 = smov %s1780_s30 }
 0x258   :  { %1238 = vsyncpa [#allocation4], 1 }
 0x259   :  { %1240 = vsyncpa [#allocation4 + $0x1], 1 }

</bundles_post_ra>
